<compile_context>
chip_gen: v5e
topology: v5e:2x2
jax: 0.10.0
libtpu: 0.0.40
codegen_flags: <defaults>
</compile_context>

<pallas_src>
import jax
import jax.numpy as jnp
import numpy as np
from jax.experimental import pallas as pl
from jax.experimental.pallas import tpu as pltpu


# ----------------------------------------------------------------------------
# Fused kernel: attention head + Sobel magnitude, per batch tile.
# ----------------------------------------------------------------------------
def _make_fused_kernel(H, W):
    HW = H * W
    # flat-index neighbor offsets for the 3x3 stencil
    neigh = (-W - 1, -W, -W + 1, -1, 1, W - 1, W, W + 1)

    def kernel(x_ref, w1_ref, b1_ref, w2_ref, mask_ref, o_ref):
        bt = x_ref.shape[0]                      # static batch tile
        w1 = w1_ref[...]                         # (D, C)   (bf16 or f32)
        b1 = b1_ref[...]                         # (D, 1)   f32
        w2 = w2_ref[...]                         # (D, 1)   f32
        mask = mask_ref[...]                     # (1, HW)  f32 interior mask

        for b in range(bt):                      # small static unroll
            x = x_ref[b]                                         # (C, HW)
            # 1x1 conv #1 (MXU, f32 accumulation) + bias + ReLU
            h = jnp.dot(w1, x, preferred_element_type=jnp.float32) + b1
            h = jnp.maximum(h, 0.0)                               # (D, HW) f32
            # 1x1 conv #2 (D -> 1): VPU multiply + sublane reduce, then sigmoid
            a = jax.nn.sigmoid(jnp.sum(h * w2, axis=0, keepdims=True))  # (1, HW)

            # Sobel on the flat map via lane rotations.  Wrap-around only
            # corrupts border pixels, which are zeroed by `mask` anyway.
            sh = {s: pltpu.roll(a, (-s) % HW, 1) for s in neigh}  # A[k + s]
            gx = ((sh[-W + 1] - sh[-W - 1])
                  + 2.0 * (sh[1] - sh[-1])
                  + (sh[W + 1] - sh[W - 1]))
            gy = ((sh[W - 1] - sh[-W - 1])
                  + 2.0 * (sh[W] - sh[-W])
                  + (sh[W + 1] - sh[-W + 1]))
            mag = (jnp.abs(gx) + jnp.abs(gy)) * mask              # zero border
            o_ref[b] = mag.astype(o_ref.dtype)                    # lane-dense store

    return kernel


def _pick_batch_tile(N, C, HW, itemsize):
    """Images per grid step: amortize per-step overhead, stay VMEM-friendly."""
    budget_elems = (2 * 1024 * 1024) // max(itemsize, 1)   # ~2 MiB of x per block
    bt = max(1, min(8, budget_elems // max(C * HW, 1)))
    bt = min(bt, N)
    if N >= 2:
        bt = min(bt, N // 2)       # keep >=2 grid steps for 2-TC sharding (v7x)
    bt = max(bt, 1)
    while N % bt:
        bt -= 1
    return bt


# ----------------------------------------------------------------------------
# Wrapper
# ----------------------------------------------------------------------------
def conv_attention_forward(x_nchw, w1, b1, w2):
    """
    x_nchw : (N, C, H, W)  float32 or bfloat16 (bf16 recommended on v6e/v7x)
    w1     : (D, C)        Conv2d(C, D, 1) weight (squeezed), same dtype as x
    b1     : (D,)          Conv2d bias, float32
    w2     : (1, D)        Conv2d(D, 1, 1, bias=False) weight (squeezed), float32
    returns (N, 1, H, W) float32
    """
    N, C, H, W = x_nchw.shape
    D = w1.shape[0]
    HW = H * W

    x3 = x_nchw.reshape(N, C, HW)                 # free reshape of NCHW
    b1_col = b1.reshape(D, 1).astype(jnp.float32)
    w2_col = w2.reshape(D, 1).astype(jnp.float32)

    mask_np = np.zeros((H, W), np.float32)
    if H > 2 and W > 2:
        mask_np[1:H - 1, 1:W - 1] = 1.0
    mask = jnp.asarray(mask_np.reshape(1, HW))

    bt = _pick_batch_tile(N, C, HW, jnp.dtype(x3.dtype).itemsize)
    grid = (N // bt,)

    kernel = _make_fused_kernel(H, W)

    out = pl.pallas_call(
        kernel,
        out_shape=jax.ShapeDtypeStruct((N, 1, HW), jnp.float32),
        grid=grid,
        in_specs=[
            pl.BlockSpec((bt, C, HW), lambda n: (n, 0, 0)),   # x tile
            pl.BlockSpec((D, C), lambda n: (0, 0)),           # w1
            pl.BlockSpec((D, 1), lambda n: (0, 0)),           # b1
            pl.BlockSpec((D, 1), lambda n: (0, 0)),           # w2
            pl.BlockSpec((1, HW), lambda n: (0, 0)),          # interior mask
        ],
        out_specs=pl.BlockSpec((bt, 1, HW), lambda n: (n, 0, 0)),
        compiler_params=pltpu.CompilerParams(
            dimension_semantics=("parallel",),
            vmem_limit_bytes=32 * 1024 * 1024),
    )(x3, w1, b1_col, w2_col, mask)

    return out.reshape(N, 1, H, W)


# ----------------------------------------------------------------------------
# Pure-JAX reference (same math, f32), for a correctness check.
# ----------------------------------------------------------------------------
def reference_forward(x_nchw, w1, b1, w2):
    N, C, H, W = x_nchw.shape
    xf = x_nchw.astype(jnp.float32).reshape(N, C, H * W)
    w1f = w1.astype(jnp.float32)
    h = jnp.einsum('dc,ncp->ndp', w1f, xf,
                   precision=jax.lax.Precision.HIGHEST)
    h = jnp.maximum(h + b1.reshape(1, -1, 1).astype(jnp.float32), 0.0)
    a = jnp.einsum('od,ndp->nop', w2.astype(jnp.float32), h,
                   precision=jax.lax.Precision.HIGHEST)
    A = jax.nn.sigmoid(a).reshape(N, H, W)

    def shv(di, dj):
        return A[:, di:di + H - 2, dj:dj + W - 2]

    gx = (-shv(0, 0) + shv(0, 2) - 2 * shv(1, 0) + 2 * shv(1, 2)
          - shv(2, 0) + shv(2, 2))
    gy = (-shv(0, 0) - 2 * shv(0, 1) - shv(0, 2)
          + shv(2, 0) + 2 * shv(2, 1) + shv(2, 2))
    mag = jnp.abs(gx) + jnp.abs(gy)
    out = jnp.zeros((N, H, W), jnp.float32).at[:, 1:H - 1, 1:W - 1].set(mag)
    return out.reshape(N, 1, H, W)


if __name__ == "__main__":
    # Small shapes consistent with the module (inchannels divisible by 8).
    N, C, H, W = 2, 32, 16, 16
    D = C // 8

    key = jax.random.PRNGKey(0)
    kx, kw1, kb1, kw2 = jax.random.split(key, 4)

    x = jax.random.normal(kx, (N, C, H, W), jnp.float32)
    w1 = jax.random.normal(kw1, (D, C), jnp.float32) * 0.1   # Conv2d(C, C//8, 1) weight
    b1 = jax.random.normal(kb1, (D,), jnp.float32) * 0.1     # Conv2d(C, C//8, 1) bias
    w2 = jax.random.normal(kw2, (1, D), jnp.float32) * 0.1   # Conv2d(C//8, 1, 1) weight

    # bf16 on the HBM/MXU-bound streams (x, w1); f32 elementwise params.
    x_bf = x.astype(jnp.bfloat16)
    w1_bf = w1.astype(jnp.bfloat16)

    fwd = jax.jit(conv_attention_forward)
    y = jax.block_until_ready(fwd(x_bf, w1_bf, b1, w2))

    y_ref = jax.block_until_ready(reference_forward(x_bf, w1_bf, b1, w2))
    assert y.shape == (N, 1, H, W), y.shape
    np.testing.assert_allclose(np.asarray(y), np.asarray(y_ref),
                               rtol=1e-4, atol=1e-4)

    print("KERNEL_OK")
</pallas_src>

<mosaic_0001>
module attributes {stable_mosaic.version = 11 : i64} {
  func.func @kernel(%arg0: i32, %arg1: memref<1x32x256xbf16, #tpu.memory_space<vmem>>, %arg2: memref<4x32xbf16, #tpu.memory_space<vmem>>, %arg3: memref<4x1xf32, #tpu.memory_space<vmem>>, %arg4: memref<4x1xf32, #tpu.memory_space<vmem>>, %arg5: memref<1x256xf32, #tpu.memory_space<vmem>>, %arg6: memref<1x1x256xf32, #tpu.memory_space<vmem>>) attributes {dimension_semantics = [#tpu.dimension_semantics<parallel>], iteration_bounds = array<i64: 2>, scalar_prefetch = 0 : i64, scratch_operands = 0 : i64, tpu.core_type = #tpu.core_type<tc>, window_params = [{transform_indices = @transform_0, window_bounds = array<i64: 1, 32, 256>}, {pipeline_mode = #tpu.pipeline_mode<synchronous>, transform_indices = @transform_1, window_bounds = array<i64: 4, 32>}, {pipeline_mode = #tpu.pipeline_mode<synchronous>, transform_indices = @transform_2, window_bounds = array<i64: 4, 1>}, {pipeline_mode = #tpu.pipeline_mode<synchronous>, transform_indices = @transform_3, window_bounds = array<i64: 4, 1>}, {pipeline_mode = #tpu.pipeline_mode<synchronous>, transform_indices = @transform_4, window_bounds = array<i64: 1, 256>}, {transform_indices = @transform_5, window_bounds = array<i64: 1, 1, 256>}]} {
    %c0 = arith.constant 0 : index
    %c0_0 = arith.constant 0 : index
    %0 = vector.load %arg2[%c0, %c0_0] : memref<4x32xbf16, #tpu.memory_space<vmem>>, vector<4x32xbf16>
    %c0_1 = arith.constant 0 : index
    %c0_2 = arith.constant 0 : index
    %1 = vector.load %arg3[%c0_1, %c0_2] : memref<4x1xf32, #tpu.memory_space<vmem>>, vector<4x1xf32>
    %c0_3 = arith.constant 0 : index
    %c0_4 = arith.constant 0 : index
    %2 = vector.load %arg4[%c0_3, %c0_4] : memref<4x1xf32, #tpu.memory_space<vmem>>, vector<4x1xf32>
    %c0_5 = arith.constant 0 : index
    %c0_6 = arith.constant 0 : index
    %3 = vector.load %arg5[%c0_5, %c0_6] : memref<1x256xf32, #tpu.memory_space<vmem>>, vector<1x256xf32>
    %c0_7 = arith.constant 0 : index
    %c0_8 = arith.constant 0 : index
    %c0_9 = arith.constant 0 : index
    %4 = vector.load %arg1[%c0_7, %c0_8, %c0_9] : memref<1x32x256xbf16, #tpu.memory_space<vmem>>, vector<1x32x256xbf16>
    %5 = vector.shape_cast %4 : vector<1x32x256xbf16> to vector<32x256xbf16>
    %cst = arith.constant dense<0.000000e+00> : vector<4x256xf32>
    %6 = tpu.matmul %0, %5, %cst {dimension_numbers = #tpu.dot_dimension_numbers<[1], [0], [0], [1], [0, 0, 1, 1], [], []>} : vector<4x32xbf16>, vector<32x256xbf16>, vector<4x256xf32> -> vector<4x256xf32>
    %7 = vector.broadcast %1 : vector<4x1xf32> to vector<4x256xf32>
    %8 = arith.addf %6, %7 : vector<4x256xf32>
    %cst_10 = arith.constant 0.000000e+00 : f32
    %9 = vector.broadcast %cst_10 : f32 to vector<4x256xf32>
    %10 = arith.maximumf %8, %9 : vector<4x256xf32>
    %11 = vector.broadcast %2 : vector<4x1xf32> to vector<4x256xf32>
    %12 = arith.mulf %10, %11 : vector<4x256xf32>
    %cst_11 = arith.constant dense<0.000000e+00> : vector<256xf32>
    %13 = vector.multi_reduction <add>, %12, %cst_11 [0] : vector<4x256xf32> to vector<256xf32>
    %14 = vector.shape_cast %13 : vector<256xf32> to vector<1x256xf32>
    %15 = arith.negf %14 : vector<1x256xf32>
    %16 = math.exp %15 : vector<1x256xf32>
    %cst_12 = arith.constant 1.000000e+00 : f32
    %17 = vector.broadcast %cst_12 : f32 to vector<1x256xf32>
    %18 = arith.addf %17, %16 : vector<1x256xf32>
    %19 = arith.divf %17, %18 : vector<1x256xf32>
    %c17_i32 = arith.constant 17 : i32
    %20 = tpu.dynamic_rotate %19 by %c17_i32 dim 1 : vector<1x256xf32>, i32 -> vector<1x256xf32>
    %c16_i32 = arith.constant 16 : i32
    %21 = tpu.dynamic_rotate %19 by %c16_i32 dim 1 : vector<1x256xf32>, i32 -> vector<1x256xf32>
    %c15_i32 = arith.constant 15 : i32
    %22 = tpu.dynamic_rotate %19 by %c15_i32 dim 1 : vector<1x256xf32>, i32 -> vector<1x256xf32>
    %c1_i32 = arith.constant 1 : i32
    %23 = tpu.dynamic_rotate %19 by %c1_i32 dim 1 : vector<1x256xf32>, i32 -> vector<1x256xf32>
    %c255_i32 = arith.constant 255 : i32
    %24 = tpu.dynamic_rotate %19 by %c255_i32 dim 1 : vector<1x256xf32>, i32 -> vector<1x256xf32>
    %c241_i32 = arith.constant 241 : i32
    %25 = tpu.dynamic_rotate %19 by %c241_i32 dim 1 : vector<1x256xf32>, i32 -> vector<1x256xf32>
    %c240_i32 = arith.constant 240 : i32
    %26 = tpu.dynamic_rotate %19 by %c240_i32 dim 1 : vector<1x256xf32>, i32 -> vector<1x256xf32>
    %c239_i32 = arith.constant 239 : i32
    %27 = tpu.dynamic_rotate %19 by %c239_i32 dim 1 : vector<1x256xf32>, i32 -> vector<1x256xf32>
    %28 = arith.subf %22, %20 : vector<1x256xf32>
    %29 = arith.subf %24, %23 : vector<1x256xf32>
    %cst_13 = arith.constant 2.000000e+00 : f32
    %30 = vector.broadcast %cst_13 : f32 to vector<1x256xf32>
    %31 = arith.mulf %30, %29 : vector<1x256xf32>
    %32 = arith.addf %28, %31 : vector<1x256xf32>
    %33 = arith.subf %27, %25 : vector<1x256xf32>
    %34 = arith.addf %32, %33 : vector<1x256xf32>
    %35 = arith.subf %25, %20 : vector<1x256xf32>
    %36 = arith.subf %26, %21 : vector<1x256xf32>
    %cst_14 = arith.constant 2.000000e+00 : f32
    %37 = vector.broadcast %cst_14 : f32 to vector<1x256xf32>
    %38 = arith.mulf %37, %36 : vector<1x256xf32>
    %39 = arith.addf %35, %38 : vector<1x256xf32>
    %40 = arith.subf %27, %22 : vector<1x256xf32>
    %41 = arith.addf %39, %40 : vector<1x256xf32>
    %42 = math.absf %34 : vector<1x256xf32>
    %43 = math.absf %41 : vector<1x256xf32>
    %44 = arith.addf %42, %43 : vector<1x256xf32>
    %45 = arith.mulf %44, %3 : vector<1x256xf32>
    %c0_15 = arith.constant 0 : index
    %c0_16 = arith.constant 0 : index
    %c0_17 = arith.constant 0 : index
    %46 = vector.load %arg6[%c0_15, %c0_16, %c0_17] : memref<1x1x256xf32, #tpu.memory_space<vmem>>, vector<1x1x256xf32>
    %47 = vector.shape_cast %46 : vector<1x1x256xf32> to vector<1x256xf32>
    %48 = vector.shape_cast %45 : vector<1x256xf32> to vector<1x1x256xf32>
    tpu.vector_store %arg6[%c0_15, %c0_16, %c0_17], %48 {strides = array<i32>} : memref<1x1x256xf32, #tpu.memory_space<vmem>>, vector<1x1x256xf32>,
    return
  }
  func.func @transform_0(%arg0: i32) -> (i32, i32, i32) {
    %c0_i32 = arith.constant 0 : i32
    %c0_i32_0 = arith.constant 0 : i32
    %c0_i32_1 = arith.constant 0 : i32
    return %arg0, %c0_i32, %c0_i32_0 : i32, i32, i32
  }
  func.func @transform_1(%arg0: i32) -> (i32, i32) {
    %c0_i32 = arith.constant 0 : i32
    %c0_i32_0 = arith.constant 0 : i32
    %c0_i32_1 = arith.constant 0 : i32
    return %c0_i32, %c0_i32_0 : i32, i32
  }
  func.func @transform_2(%arg0: i32) -> (i32, i32) {
    %c0_i32 = arith.constant 0 : i32
    %c0_i32_0 = arith.constant 0 : i32
    %c0_i32_1 = arith.constant 0 : i32
    return %c0_i32, %c0_i32_0 : i32, i32
  }
  func.func @transform_3(%arg0: i32) -> (i32, i32) {
    %c0_i32 = arith.constant 0 : i32
    %c0_i32_0 = arith.constant 0 : i32
    %c0_i32_1 = arith.constant 0 : i32
    return %c0_i32, %c0_i32_0 : i32, i32
  }
  func.func @transform_4(%arg0: i32) -> (i32, i32) {
    %c0_i32 = arith.constant 0 : i32
    %c0_i32_0 = arith.constant 0 : i32
    %c0_i32_1 = arith.constant 0 : i32
    return %c0_i32, %c0_i32_0 : i32, i32
  }
  func.func @transform_5(%arg0: i32) -> (i32, i32, i32) {
    %c0_i32 = arith.constant 0 : i32
    %c0_i32_0 = arith.constant 0 : i32
    %c0_i32_1 = arith.constant 0 : i32
    return %arg0, %c0_i32, %c0_i32_0 : i32, i32, i32
  }
}

</mosaic_0001>

<bundles_post_ra>
// kernel: conv_attention_forward.1
= control target key start
LH: loop header
LB: loop body
LE: loop exit
PB: predicated region body
PF: predicated region fallthrough
CT: control target
= control target key end

     0   :  { %s616_s18 = smov 0   ;;  %s653_s0 = inlined_call_operand.vmem [shape: bf16[2,32,256], index: 0, kind: input, shape index: {}]   ;;  %s654_s1 = inlined_call_operand.vmem [shape: bf16[4,32], index: 1, kind: input, shape index: {}]   ;;  %s655_s2 = inlined_call_operand.vmem [shape: f32[4,1], index: 2, kind: input, shape index: {}]   ;;  %s656_s3 = inlined_call_operand.vmem [shape: f32[4,1], index: 3, kind: input, shape index: {}]   ;;  %s657_s4 = inlined_call_operand.vmem [shape: f32[1,256], index: 4, kind: input, shape index: {}]   ;;  %s658_s5 = inlined_call_operand.vmem [shape: f32[2,1,256], index: 5, kind: output, shape index: {}]  }
   0x1 LB: > { %s508_s19 = sadd.s32 4294967295, %s575_s18   ;;  %p512_p0 = scmp.ge.s32.totalorder %s575_s18, 1  ;;  %s575_s18 = sphi %s616_s18, %s15_s18  }
   0x2   : > { %p187_p1 = scmp.lt.s32.totalorder %s575_s18, 3 }
   0x4   : > { %p188_p2 = pnand %p512_p0, %p187_p1 }
   0x5   : > { %p214_p3 = scmp.lt.s32.totalorder (!%p188_p2), %s508_s19, 1  ;;  %s578_s30 = smov (!%p188_p2), 127  }
   0x6   : > { %191 = sbr.rel (%p188_p2) target bundleno = 369 (0x171), region = 40  ;;  %s579_s6 = smov (!%p188_p2), 1  }
   0x7   : > { %s580_s7 = smov (!%p188_p2), 16   ;;  %s581_s8 = smov (!%p188_p2), 112  }
   0x8   : > { %s582_s9 = smov (!%p188_p2), 15   ;;  %s583_s10 = smov (!%p188_p2), 113  }
   0x9   : > { %s584_s11 = smov (!%p188_p2), 17   ;;  %s585_s12 = smov (!%p188_p2), 111  }
   0xb   : > { %v225_v0 = vld [vmem:[%s655_s2] sm:$0xf]  ;;  %v577_v1 = vmov 0   ;;  %s660_s19 = smov (!%p214_p3, %s508_s19), 1  ;;  %vm257_vm0 = vcmask 261120   ;;  %vm296_vm1 = vcmask 1043456  }
   0xc   : > { %560 = vset.pattern.permute.xlu0 %v577_v1  ;;  %s538_s22 = sshll.u32 %s660_s19, 5  ;;  %v226_v2 = vld [vmem:[%s656_s3] sm:$0xf]  ;;  %s515_s15 = sshll.u32 %s660_s19, 1 }
   0xd   : > { %234 = vperm.xlu0 %560, %v225_v0   ;;  %s218_s25 = scalar_lea.vmem %s653_s0, %s538_s22  ;;  %v224_v15 = vld [vmem:[%s654_s1] sm:$0x3]  ;;  %s222_s20 = scalar_lea.vmem %s658_s5, %s515_s15 }
   0xe   : > { %v526_v3 = vld [vmem:[%s218_s25 + $0x10] sm:$0xf]  ;;  %v542_v4 = vld [vmem:[%s218_s25 + $0x14] sm:$0xf0]  ;;  %v541_v5 = vld [vmem:[%s218_s25 + $0x14] sm:$0xf] }
   0xf   : > { %v527_v6 = vor.u32 %v542_v4, %v526_v3  ;;  %v528_v7 = vld [vmem:[%s218_s25 + $0x18] sm:$0xf0]  ;;  %v518_v8 = vld [vmem:[%s218_s25] sm:$0xf]  ;;  %v540_v9 = vld [vmem:[%s218_s25 + $0x4] sm:$0xf0] }
  0x10   : > { %v531_v10 = vor.u32 %v541_v5, %v528_v7  ;;  %v539_v11 = vld [vmem:[%s218_s25 + $0x4] sm:$0xf]  ;;  %v520_v12 = vld [vmem:[%s218_s25 + $0x8] sm:$0xf0]  ;;  %v519_v13 = vor.u32 %v540_v9, %v518_v8 }
  0x11   : > { %267 = vmatpush.bf16.msra.mxu0 %v527_v6  ;;  %v523_v14 = vor.u32 %v539_v11, %v520_v12 }
  0x12   : > { %280 = vmatpush.bf16.msra.mxu1 %v531_v10 }
  0x15   : > { %291 = vperm.xlu0 %560, %v226_v2   ;;  %268 = vmatpush.bf16.msra.mxu0 %v519_v13 }
  0x16   : > { %281 = vmatpush.bf16.msra.mxu1 %v523_v14  ;;  %v353_v14 = vlaneseq }
  0x18   : > { %532 = vmatmul.msk.bf16.vlgmr.msra.gmra.mxu0 %vm257_vm0, %v224_v15 }
  0x19   : > { %533 = vmatmul.msk.bf16.vlgmr.msra.gmra.mxu1 %vm257_vm0, %v224_v15 }
  0x7f   : > { %v235_v16 = vpop.permute.xlu0 %234 }
  0x87   : > { %v292_v22 = vpop.permute.xlu0 %291 }
  0x95   : > { %v270_v17 = vpop.f32.mrf.mxu0 }
  0x96   : > { %v271_v18 = vadd.f32 %v270_v17, %v235_v16  ;;  %v283_v19 = vpop.f32.mrf.mxu1 }
  0x97   : > { %v284_v20 = vadd.f32 %v283_v19, %v235_v16  ;;  %v354_v16 = vand.u32 127, %v353_v14 }
  0x98   : > { %v287_v21 = vmax.f32 %v271_v18, 0.0 }
  0x99   : > { %v288_v23 = vmax.f32 %v284_v20, 0.0  ;;  %vm397_vm10 = vcmp.lt.s32.totalorder %v354_v16, 112  ;;  %vm362_vm11 = vcmp.lt.s32.totalorder %v354_v16, 16  ;;  %vm376_vm12 = vcmp.lt.s32.totalorder %v354_v16, 1 }
  0x9a   : > { %v294_v24 = vmul.f32 %v292_v22, %v287_v21  ;;  %vm383_vm13 = vcmp.lt.s32.totalorder %v354_v16, 127  ;;  %vm390_vm14 = vcmp.lt.s32.totalorder %v354_v16, 113  ;;  %vm355_vm15 = vcmp.lt.s32.totalorder %v354_v16, 17 }
  0x9b   : > { %v295_v25 = vmul.f32 %v292_v22, %v288_v23  ;;  %vm369_vm0 = vcmp.lt.s32.totalorder %v354_v16, 15 }
  0x9c   : > { %v297_v26 = vsel %vm296_vm1, %v294_v24, 0.0 }
  0x9d   : > { %v298_v27 = vrot.slane %v297_v26, 4  ;;  %v304_v28 = vsel %vm296_vm1, %v295_v25, 0.0  ;;  %v272_v29 = vpop.f32.mrf.mxu0  ;;  %vm404_vm1 = vcmp.lt.s32.totalorder %v354_v16, 111 }
  0x9e   : > { %v305_v30 = vrot.slane %v304_v28, 4  ;;  %v285_v31 = vpop.f32.mrf.mxu1 }
  0x9f   : > { %v299_v32 = vadd.f32 %v298_v27, %v297_v26 }
  0xa0   : > { %v306_v33 = vadd.f32 %v305_v30, %v304_v28 }
  0xa1   : > { %v300_v34 = vrot.slane %v299_v32, 2 }
  0xa2   : > { %v307_v35 = vrot.slane %v306_v33, 2 }
  0xa3   : > { %v301_v36 = vadd.f32 %v300_v34, %v299_v32 }
  0xa4   : > { %v308_v37 = vadd.f32 %v307_v35, %v306_v33 }
  0xa5   : > { %v302_v38 = vrot.slane %v301_v36, 1 }
  0xa6   : > { %v309_v39 = vrot.slane %v308_v37, 1 }
  0xa7   : > { %v303_v40 = vadd.f32 %v302_v38, %v301_v36 }
  0xa8   : > { %v310_v41 = vadd.f32 %v309_v39, %v308_v37 }
  0xa9   : > { %v534_v42 = vmul.f32 -1.442695, %v303_v40 }
  0xaa   : > { %v535_v43 = vmul.f32 -1.442695, %v310_v41 }
  0xab   : > { %561 = vpow2.f32 %v534_v42 }
  0xac   : > { %563 = vpow2.f32 %v535_v43 }
  0xb1   : > { %v562_v44 = vpop.eup %561 }
  0xb2   : > { %v564_v45 = vpop.eup %563  ;;  %v317_v46 = vadd.f32 1.0, %v562_v44 }
  0xb3   : > { %v318_v47 = vadd.f32 1.0, %v564_v45 }
  0xb4   : > { %565 = vrcp.f32 %v317_v46  ;;  %v330_v54 = vand.u32 2147483648, %v317_v46  ;;  %v328_v56 = vand.u32 2147483647, %v317_v46  ;;  %vm324_vm3 = vweird.f32 %v317_v46 }
  0xb5   : > { %567 = vrcp.f32 %v318_v47  ;;  %v345_v63 = vand.u32 2147483648, %v318_v47  ;;  %vm339_vm7 = vweird.f32 %v318_v47  ;;  %v343_v0 = vand.u32 2147483647, %v318_v47 }
  0xb6   : > { %v331_v59 = vor.u32 1.1754944e-38, %v330_v54  ;;  %vm329_vm5 = vcmp.eq.f32.partialorder %v328_v56, 8.507059e+37 }
  0xb7   : > { %v346_v2 = vor.u32 1.1754944e-38, %v345_v63  ;;  %vm344_vm9 = vcmp.eq.f32.partialorder %v343_v0, 8.507059e+37 }
  0xba   : > { %v566_v48 = vpop.eup %565 }
  0xbb   : > { %v568_v49 = vpop.eup %567  ;;  %v320_v50 = vmul.f32 %v566_v48, %v317_v46  ;;  %vm325_vm2 = vweird.f32 %v566_v48 }
  0xbc   : > { %v335_v51 = vmul.f32 %v568_v49, %v318_v47  ;;  %vm326_vm4 = vmor %vm324_vm3, %vm325_vm2  ;;  %vm340_vm6 = vweird.f32 %v568_v49  ;;  %vm447_vm2 = vcmask 1040384   ;;  %vm452_vm3 = vcmp.lt.s32.totalorder %v353_v14, 256 }
  0xbd   : > { %v321_v52 = vsub.f32 1.0, %v320_v50  ;;  %vm341_vm8 = vmor %vm339_vm7, %vm340_vm6 }
  0xbe   : > { %v336_v53 = vsub.f32 1.0, %v335_v51 }
  0xbf   : > { %v322_v55 = vmul.f32 %v566_v48, %v321_v52 }
  0xc0   : > { %v337_v58 = vmul.f32 %v568_v49, %v336_v53 }
  0xc1   : > { %v323_v57 = vadd.f32 %v566_v48, %v322_v55 }
  0xc2   : > { %v338_v62 = vadd.f32 %v568_v49, %v337_v58  ;;  %v227_v58 = vld [vmem:[%s657_s4] sm:$0x3] }
  0xc3   : > { %v327_v60 = vsel %vm326_vm4, %v566_v48, %v323_v57 }
  0xc4   : > { %v332_v61 = vsel %vm329_vm5, %v331_v59, %v327_v60  ;;  %v342_v1 = vsel %vm341_vm8, %v568_v49, %v338_v62 }
  0xc5   : > { %379 = vrot.lane.b32.xlu0 %v332_v61, %s578_s30  ;;  %372 = vrot.lane.b32.xlu2 %v332_v61, %s579_s6  ;;  %v347_v3 = vsel %vm344_vm9, %v346_v2, %v342_v1  ;;  %v439_v2 = vperm.slane %v227_v58, 1 }
  0xc6   : > { %358 = vrot.lane.b32.xlu1 %v332_v61, %s580_s7 }
  0xcd   : > { %395 = vrot.lane.b32.xlu0 %v347_v3, %s581_s8  ;;  %374 = vrot.lane.b32.xlu2 %v347_v3, %s579_s6 }
  0xce   : > { %360 = vrot.lane.b32.xlu1 %v347_v3, %s580_s7 }
  0xd5   : > { %365 = vrot.lane.b32.xlu0 %v332_v61, %s582_s9  ;;  %393 = vrot.lane.b32.xlu2 %v332_v61, %s581_s8 }
  0xd6   : > { %381 = vrot.lane.b32.xlu1 %v347_v3, %s578_s30 }
  0xdd   : > { %388 = vrot.lane.b32.xlu0 %v347_v3, %s583_s10  ;;  %351 = vrot.lane.b32.xlu2 %v347_v3, %s584_s11 }
  0xde   : > { %349 = vrot.lane.b32.xlu1 %v332_v61, %s584_s11 }
  0xe5   : > { %386 = vrot.lane.b32.xlu2 %v332_v61, %s583_s10 }
  0xe6   : > { %367 = vrot.lane.b32.xlu1 %v347_v3, %s582_s9 }
  0xed   : > { %402 = vrot.lane.b32.xlu2 %v347_v3, %s585_s12 }
  0xee   : > { %400 = vrot.lane.b32.xlu1 %v332_v61, %s585_s12 }
 0x11f   : > { %v373_v4 = vpop.permute.xlu2 %372 }
 0x127   : > { %v375_v5 = vpop.permute.xlu2 %374 }
 0x128   : > { %v377_v23 = vsel %vm376_vm12, %v373_v4, %v375_v5  ;;  %v378_v24 = vsel %vm376_vm12, %v375_v5, %v373_v4  ;;  %v438_v4 = vperm.slane %v227_v58, 0 }
 0x12f   : > { %v394_v9 = vpop.permute.xlu2 %393 }
 0x137   : > { %v380_v6 = vpop.permute.xlu0 %379  ;;  %v352_v12 = vpop.permute.xlu2 %351 }
 0x138   : > { %v359_v7 = vpop.permute.xlu1 %358 }
 0x13f   : > { %v396_v10 = vpop.permute.xlu0 %395  ;;  %v387_v17 = vpop.permute.xlu2 %386 }
 0x140   : > { %v361_v8 = vpop.permute.xlu1 %360  ;;  %v398_v19 = vsel %vm397_vm10, %v394_v9, %v396_v10  ;;  %v399_v20 = vsel %vm397_vm10, %v396_v10, %v394_v9 }
 0x141   : > { %v363_v21 = vsel %vm362_vm11, %v359_v7, %v361_v8  ;;  %v364_v22 = vsel %vm362_vm11, %v361_v8, %v359_v7 }
 0x142   : > { %v421_v32 = vsub.f32 %v398_v19, %v364_v22  ;;  %v422_v33 = vsub.f32 %v399_v20, %v363_v21 }
 0x144   : > { %v423_v42 = vmul.f32 2.0, %v421_v32  ;;  %v424_v43 = vmul.f32 2.0, %v422_v33 }
 0x147   : > { %v366_v13 = vpop.permute.xlu0 %365  ;;  %v403_v46 = vpop.permute.xlu2 %402 }
 0x148   : > { %v382_v11 = vpop.permute.xlu1 %381 }
 0x149   : > { %v384_v25 = vsel %vm383_vm13, %v380_v6, %v382_v11  ;;  %v385_v26 = vsel %vm383_vm13, %v382_v11, %v380_v6 }
 0x14a   : > { %v409_v36 = vsub.f32 %v384_v25, %v378_v24  ;;  %v410_v37 = vsub.f32 %v385_v26, %v377_v23 }
 0x14c   : > { %v411_v44 = vmul.f32 2.0, %v409_v36  ;;  %v412_v45 = vmul.f32 2.0, %v410_v37 }
 0x14f   : > { %v389_v18 = vpop.permute.xlu0 %388 }
 0x150   : > { %v350_v15 = vpop.permute.xlu1 %349  ;;  %v391_v28 = vsel %vm390_vm14, %v387_v17, %v389_v18  ;;  %v392_v29 = vsel %vm390_vm14, %v389_v18, %v387_v17 }
 0x151   : > { %v356_v30 = vsel %vm355_vm15, %v350_v15, %v352_v12  ;;  %v357_v31 = vsel %vm355_vm15, %v352_v12, %v350_v15 }
 0x152   : > { %v419_v38 = vsub.f32 %v391_v28, %v357_v31  ;;  %v420_v39 = vsub.f32 %v392_v29, %v356_v30 }
 0x154   : > { %v425_v47 = vadd.f32 %v423_v42, %v419_v38  ;;  %v426_v48 = vadd.f32 %v424_v43, %v420_v39 }
 0x158   : > { %v368_v27 = vpop.permute.xlu1 %367 }
 0x159   : > { %v370_v34 = vsel %vm369_vm0, %v366_v13, %v368_v27  ;;  %v371_v35 = vsel %vm369_vm0, %v368_v27, %v366_v13 }
 0x15a   : > { %v407_v40 = vsub.f32 %v371_v35, %v357_v31  ;;  %v408_v41 = vsub.f32 %v370_v34, %v356_v30 }
 0x15c   : > { %v413_v50 = vadd.f32 %v411_v44, %v407_v40  ;;  %v414_v51 = vadd.f32 %v412_v45, %v408_v41 }
 0x160   : > { %v401_v49 = vpop.permute.xlu1 %400 }
 0x161   : > { %v405_v52 = vsel %vm404_vm1, %v401_v49, %v403_v46  ;;  %v406_v53 = vsel %vm404_vm1, %v403_v46, %v401_v49 }
 0x162   : > { %v415_v54 = vsub.f32 %v405_v52, %v391_v28  ;;  %v416_v55 = vsub.f32 %v406_v53, %v392_v29  ;;  %v427_v56 = vsub.f32 %v405_v52, %v371_v35  ;;  %v428_v57 = vsub.f32 %v406_v53, %v370_v34 }
 0x164   : > { %v417_v59 = vadd.f32 %v415_v54, %v413_v50  ;;  %v418_v60 = vadd.f32 %v416_v55, %v414_v51  ;;  %v429_v61 = vadd.f32 %v427_v56, %v425_v47  ;;  %v430_v62 = vadd.f32 %v428_v57, %v426_v48 }
 0x166   : > { %v431_v63 = vand.u32 2147483647, %v417_v59  ;;  %v432_v0 = vand.u32 2147483647, %v418_v60  ;;  %v433_v1 = vand.u32 2147483647, %v429_v61 }
 0x167   : > { %v434_v3 = vand.u32 2147483647, %v430_v62 }
 0x168   : > { %v435_v5 = vadd.f32 %v433_v1, %v431_v63 }
 0x169   : > { %v436_v6 = vadd.f32 %v434_v3, %v432_v0 }
 0x16a   : > { %v442_v8 = vmul.f32 %v438_v4, %v435_v5 }
 0x16b   : > { %v443_v7 = vmul.f32 %v439_v2, %v436_v6 }
 0x16d   : > { %v446_v9 = vrot.slane %v443_v7, 7 }
 0x16f   : > { %v448_v10 = vsel %vm447_vm2, %v442_v8, %v446_v9 }
 0x170   : > { %454 = vst.msk [vmem:[%s222_s20] sm:$0x3] %vm452_vm3, %v448_v10 }
 0x171 PF: > { %s15_s18 = sadd.s32 1, %s575_s18  }
 0x172   : > { %p12_p4 = scmp.ge.s32.totalorder %s15_s18, 4  }
 0x174   :  { %14 = sbr.rel (!%p12_p4) target bundleno = 1 (0x1), region = 70 }

</bundles_post_ra>
